<compile_context>
chip_gen: v7x
topology: tpu7x:2x2x1
jax: 0.10.0
libtpu: 0.0.40
codegen_flags: <defaults>
</compile_context>

<pallas_src>
import jax
import jax.numpy as jnp
from jax.experimental import pallas as pl
from jax.experimental.pallas import tpu as pltpu


def classifier_kernel(p_ref, h_ref, wp_ref, wh_ref, wph_ref, b_ref, out_ref):
    p = p_ref[...]
    h = h_ref[...]
    y = jnp.dot(p, wp_ref[...], preferred_element_type=jnp.float32)
    y = y + jnp.dot(h, wh_ref[...], preferred_element_type=jnp.float32)
    y = y + jnp.dot(p * h, wph_ref[...], preferred_element_type=jnp.float32)
    out_ref[...] = (y + b_ref[...]).astype(out_ref.dtype)


def _round_up(x, m):
    return ((x + m - 1) // m) * m


def classifier_forward(prem, hypo, params):
    """Pallas implementation of Classifier.forward.

    prem, hypo: (B, H) or (H,) float32
    params: dict with w1 (4H, F), b1 (1, F), w2 (F, F), b2 (1, F),
            w3 (F, O), b3 (1, O)   (weights stored (in, out), y = x @ W + b)
    """
    # glue: replicate the 1-D branch of the torch forward (reshape to (1, -1))
    if prem.ndim == 1:
        prem = prem.reshape(1, -1)
        hypo = hypo.reshape(1, -1)

    B, H = prem.shape
    w1, b1 = params["w1"], params["b1"]
    w2, b2 = params["w2"], params["b2"]
    w3, b3 = params["w3"], params["b3"]
    out_dim = w3.shape[1]

    # --- collapse the activation-free MLP into one affine map (exact algebra) ---
    w_eff = w1 @ w2 @ w3                        # (4H, O)
    b_eff = b1 @ w2 @ w3 + b2 @ w3 + b3         # (1, O)

    # --- fold the concat [p, h, p-h, p*h] into per-term weight slices ---
    wp = w_eff[:H] + w_eff[2 * H:3 * H]        # multiplies p
    wh = w_eff[H:2 * H] - w_eff[2 * H:3 * H]   # multiplies h
    wph = w_eff[3 * H:4 * H]                    # multiplies p*h

    # --- lane-dense output: pad O up to a multiple of 128 with zero columns ---
    o_pad = _round_up(max(out_dim, 128), 128)
    pad_cols = o_pad - out_dim
    if pad_cols:
        wp = jnp.pad(wp, ((0, 0), (0, pad_cols)))
        wh = jnp.pad(wh, ((0, 0), (0, pad_cols)))
        wph = jnp.pad(wph, ((0, 0), (0, pad_cols)))
        b_eff = jnp.pad(b_eff, ((0, 0), (0, pad_cols)))

    # --- batch grid: tile rows, keep weights resident across grid steps ---
    tm = min(512, _round_up(B, 8))
    b_padded = _round_up(B, tm)
    if b_padded != B:
        prem = jnp.pad(prem, ((0, b_padded - B), (0, 0)))
        hypo = jnp.pad(hypo, ((0, b_padded - B), (0, 0)))

    grid = (b_padded // tm,)
    act_spec = pl.BlockSpec((tm, H), lambda i: (i, 0))
    resident = lambda shape: pl.BlockSpec(shape, lambda i: (0, 0))

    out = pl.pallas_call(
        classifier_kernel,
        out_shape=jax.ShapeDtypeStruct((b_padded, o_pad), jnp.float32),
        grid=grid,
        in_specs=[
            act_spec, act_spec,
            resident(wp.shape), resident(wh.shape), resident(wph.shape),
            resident(b_eff.shape),
        ],
        out_specs=pl.BlockSpec((tm, o_pad), lambda i: (i, 0)),
        compiler_params=pltpu.CompilerParams(
            dimension_semantics=("parallel",)),
    )(prem, hypo, wp, wh, wph, b_eff)

    return out[:B, :out_dim]


def init_params(key, seq_in_size, fc_dim, out_dim):
    """Deterministic init matching nn.Linear's U(-1/sqrt(fan_in), 1/sqrt(fan_in))."""
    ks = jax.random.split(key, 6)

    def linear(kw, kb, fan_in, fan_out):
        bound = 1.0 / jnp.sqrt(fan_in)
        w = jax.random.uniform(kw, (fan_in, fan_out), jnp.float32, -bound, bound)
        b = jax.random.uniform(kb, (1, fan_out), jnp.float32, -bound, bound)
        return w, b

    w1, b1 = linear(ks[0], ks[1], seq_in_size, fc_dim)
    w2, b2 = linear(ks[2], ks[3], fc_dim, fc_dim)
    w3, b3 = linear(ks[4], ks[5], fc_dim, out_dim)
    return {"w1": w1, "b1": b1, "w2": w2, "b2": b2, "w3": w3, "b3": b3}


if __name__ == "__main__":
    # small config: plain encoder (not BiLSTM / MeanEmbedding)
    hidden_dim = 32
    seq_in_size = 4 * hidden_dim     # = 128
    fc_dim = 128
    out_dim = 8
    batch = 8

    key = jax.random.PRNGKey(0)
    k_prem, k_hypo, k_params = jax.random.split(key, 3)

    prem = jax.random.normal(k_prem, (batch, hidden_dim), jnp.float32)
    hypo = jax.random.normal(k_hypo, (batch, hidden_dim), jnp.float32)
    params = init_params(k_params, seq_in_size, fc_dim, out_dim)

    out = classifier_forward(prem, hypo, params)
    jax.block_until_ready(out)

    # pure-JAX reference (un-collapsed 3-layer MLP, as in the torch module)
    feats = jnp.concatenate([prem, hypo, prem - hypo, prem * hypo], axis=1)
    ref = feats @ params["w1"] + params["b1"]
    ref = ref @ params["w2"] + params["b2"]
    ref = ref @ params["w3"] + params["b3"]
    assert out.shape == (batch, out_dim)
    assert jnp.allclose(out, ref, atol=1e-4, rtol=1e-4), (
        jnp.max(jnp.abs(out - ref)))

    print("KERNEL_OK")
</pallas_src>

<mosaic_0001>
module attributes {stable_mosaic.version = 11 : i64} {
  func.func @classifier_kernel(%arg0: i32, %arg1: memref<8x32xf32, #tpu.memory_space<vmem>>, %arg2: memref<8x32xf32, #tpu.memory_space<vmem>>, %arg3: memref<32x128xf32, #tpu.memory_space<vmem>>, %arg4: memref<32x128xf32, #tpu.memory_space<vmem>>, %arg5: memref<32x128xf32, #tpu.memory_space<vmem>>, %arg6: memref<1x128xf32, #tpu.memory_space<vmem>>, %arg7: memref<8x128xf32, #tpu.memory_space<vmem>>) attributes {dimension_semantics = [#tpu.dimension_semantics<parallel>], iteration_bounds = array<i64: 1>, scalar_prefetch = 0 : i64, scratch_operands = 0 : i64, tpu.core_type = #tpu.core_type<tc>, window_params = [{transform_indices = @transform_0, window_bounds = array<i64: 8, 32>}, {transform_indices = @transform_1, window_bounds = array<i64: 8, 32>}, {pipeline_mode = #tpu.pipeline_mode<synchronous>, transform_indices = @transform_2, window_bounds = array<i64: 32, 128>}, {pipeline_mode = #tpu.pipeline_mode<synchronous>, transform_indices = @transform_3, window_bounds = array<i64: 32, 128>}, {pipeline_mode = #tpu.pipeline_mode<synchronous>, transform_indices = @transform_4, window_bounds = array<i64: 32, 128>}, {pipeline_mode = #tpu.pipeline_mode<synchronous>, transform_indices = @transform_5, window_bounds = array<i64: 1, 128>}, {transform_indices = @transform_6, window_bounds = array<i64: 8, 128>}]} {
    %c0 = arith.constant 0 : index
    %c0_0 = arith.constant 0 : index
    %0 = vector.load %arg1[%c0, %c0_0] : memref<8x32xf32, #tpu.memory_space<vmem>>, vector<8x32xf32>
    %c0_1 = arith.constant 0 : index
    %c0_2 = arith.constant 0 : index
    %1 = vector.load %arg2[%c0_1, %c0_2] : memref<8x32xf32, #tpu.memory_space<vmem>>, vector<8x32xf32>
    %c0_3 = arith.constant 0 : index
    %c0_4 = arith.constant 0 : index
    %2 = vector.load %arg3[%c0_3, %c0_4] : memref<32x128xf32, #tpu.memory_space<vmem>>, vector<32x128xf32>
    %cst = arith.constant dense<0.000000e+00> : vector<8x128xf32>
    %3 = tpu.matmul %0, %2, %cst {dimension_numbers = #tpu.dot_dimension_numbers<[1], [0], [0], [1], [0, 0, 1, 1], [], []>} : vector<8x32xf32>, vector<32x128xf32>, vector<8x128xf32> -> vector<8x128xf32>
    %c0_5 = arith.constant 0 : index
    %c0_6 = arith.constant 0 : index
    %4 = vector.load %arg4[%c0_5, %c0_6] : memref<32x128xf32, #tpu.memory_space<vmem>>, vector<32x128xf32>
    %cst_7 = arith.constant dense<0.000000e+00> : vector<8x128xf32>
    %5 = tpu.matmul %1, %4, %cst_7 {dimension_numbers = #tpu.dot_dimension_numbers<[1], [0], [0], [1], [0, 0, 1, 1], [], []>} : vector<8x32xf32>, vector<32x128xf32>, vector<8x128xf32> -> vector<8x128xf32>
    %6 = arith.addf %3, %5 : vector<8x128xf32>
    %7 = arith.mulf %0, %1 : vector<8x32xf32>
    %c0_8 = arith.constant 0 : index
    %c0_9 = arith.constant 0 : index
    %8 = vector.load %arg5[%c0_8, %c0_9] : memref<32x128xf32, #tpu.memory_space<vmem>>, vector<32x128xf32>
    %cst_10 = arith.constant dense<0.000000e+00> : vector<8x128xf32>
    %9 = tpu.matmul %7, %8, %cst_10 {dimension_numbers = #tpu.dot_dimension_numbers<[1], [0], [0], [1], [0, 0, 1, 1], [], []>} : vector<8x32xf32>, vector<32x128xf32>, vector<8x128xf32> -> vector<8x128xf32>
    %10 = arith.addf %6, %9 : vector<8x128xf32>
    %c0_11 = arith.constant 0 : index
    %c0_12 = arith.constant 0 : index
    %11 = vector.load %arg6[%c0_11, %c0_12] : memref<1x128xf32, #tpu.memory_space<vmem>>, vector<1x128xf32>
    %12 = vector.broadcast %11 : vector<1x128xf32> to vector<8x128xf32>
    %13 = arith.addf %10, %12 : vector<8x128xf32>
    %c0_13 = arith.constant 0 : index
    %c0_14 = arith.constant 0 : index
    %14 = vector.load %arg7[%c0_13, %c0_14] : memref<8x128xf32, #tpu.memory_space<vmem>>, vector<8x128xf32>
    tpu.vector_store %arg7[%c0_13, %c0_14], %13 {strides = array<i32>} : memref<8x128xf32, #tpu.memory_space<vmem>>, vector<8x128xf32>,
    return
  }
  func.func @transform_0(%arg0: i32) -> (i32, i32) {
    %c0_i32 = arith.constant 0 : i32
    %c0_i32_0 = arith.constant 0 : i32
    return %arg0, %c0_i32 : i32, i32
  }
  func.func @transform_1(%arg0: i32) -> (i32, i32) {
    %c0_i32 = arith.constant 0 : i32
    %c0_i32_0 = arith.constant 0 : i32
    return %arg0, %c0_i32 : i32, i32
  }
  func.func @transform_2(%arg0: i32) -> (i32, i32) {
    %c0_i32 = arith.constant 0 : i32
    %c0_i32_0 = arith.constant 0 : i32
    %c0_i32_1 = arith.constant 0 : i32
    return %c0_i32, %c0_i32_0 : i32, i32
  }
  func.func @transform_3(%arg0: i32) -> (i32, i32) {
    %c0_i32 = arith.constant 0 : i32
    %c0_i32_0 = arith.constant 0 : i32
    %c0_i32_1 = arith.constant 0 : i32
    return %c0_i32, %c0_i32_0 : i32, i32
  }
  func.func @transform_4(%arg0: i32) -> (i32, i32) {
    %c0_i32 = arith.constant 0 : i32
    %c0_i32_0 = arith.constant 0 : i32
    %c0_i32_1 = arith.constant 0 : i32
    return %c0_i32, %c0_i32_0 : i32, i32
  }
  func.func @transform_5(%arg0: i32) -> (i32, i32) {
    %c0_i32 = arith.constant 0 : i32
    %c0_i32_0 = arith.constant 0 : i32
    %c0_i32_1 = arith.constant 0 : i32
    return %c0_i32, %c0_i32_0 : i32, i32
  }
  func.func @transform_6(%arg0: i32) -> (i32, i32) {
    %c0_i32 = arith.constant 0 : i32
    %c0_i32_0 = arith.constant 0 : i32
    return %arg0, %c0_i32 : i32, i32
  }
}

</mosaic_0001>

<bundles_post_ra>
// kernel: tpu_custom_call.1
= control target key start
LH: loop header
LB: loop body
LE: loop exit
PB: predicated region body
PF: predicated region fallthrough
CT: control target
= control target key end

     0   :  { %11 = vsyncpa [#allocation3], 0  ;;  %s704_s0 = inlined_call_operand.hbm [shape: f32[8,32], index: 0, kind: input, shape index: {}]   ;;  %s705_s1 = inlined_call_operand.hbm [shape: f32[8,32], index: 1, kind: input, shape index: {}]   ;;  %s706_s2 = inlined_call_operand.hbm [shape: f32[32,128], index: 2, kind: input, shape index: {}]   ;;  %s707_s3 = inlined_call_operand.hbm [shape: f32[32,128], index: 3, kind: input, shape index: {}]   ;;  %s708_s4 = inlined_call_operand.hbm [shape: f32[32,128], index: 4, kind: input, shape index: {}]   ;;  %s709_s5 = inlined_call_operand.vmem [shape: f32[1,128], index: 5, kind: input, shape index: {}]   ;;  %s710_s6 = inlined_call_operand.hbm [shape: f32[8,128], index: 6, kind: output, shape index: {}]  }
   0x1   :  { %12 = vsyncpa [#allocation6], 0 }
   0x2   :  { %13 = vsyncpa [#allocation9], 0 }
   0x3   :  { %14 = vsyncpa [#allocation4], 0  ;;  %s571_s21 = smov [#allocation5]   ;;  %s431_s25 = scalar_lea.hbm %s705_s1, 128 }
   0x4   :  { %s31_s22 = sshll.u32 %s571_s21, 4  ;;  %p432_p0 = scmp.ne.s32.totalorder %s705_s1, %s431_s25  ;;  %s32_s22 = int_to_ptr.vmem [resolvable:$true] %s31_s22 }
   0x5   :  { %p435_p1 = scmp.lt.u32.totalorder %s431_s25, %s705_s1 }
   0x7   :  { %p437_p2 = pnand %p435_p1, %p432_p0 }
   0x9   :  { %440 = shalt.err (!%p437_p2)
}
   0xa   :  { %s441_s30 = scalar_lea.vmem %s32_s22, 128  ;;  %p446_p4 = scmp.lt.s32.totalorder %s32_s22, %s32_s22 }
   0xb   :  { %p442_p3 = scmp.ne.s32.totalorder %s32_s22, %s441_s30  ;;  %p447_p5 = scmp.lt.s32.totalorder %s441_s30, %s441_s30 }
   0xd   :  { %p448_p6 = por %p447_p5, %p446_p4 }
   0xf   :  { %p449_p7 = pnand %p448_p6, %p442_p3 }
  0x11   :  { %452 = shalt.err (!%p449_p7)
}
  0x12   :  { %34 = dma.hbm_to_vmem [thread:$0]  %s705_s1, 128, %s32_s22, [#allocation6]  }
  0x13   :  { %s572_s9 = smov [#allocation8]   ;;  %s573_s11 = smov [#allocation2]  }
  0x14   :  { %s52_s10 = sshll.u32 %s572_s9, 4  ;;  %s21_s12 = sshll.u32 %s573_s11, 4  ;;  %s53_s10 = int_to_ptr.vmem [resolvable:$true] %s52_s10  ;;  %s22_s12 = int_to_ptr.vmem [resolvable:$true] %s21_s12 }
  0x15   :  { %s453_s15 = scalar_lea.hbm %s707_s3, 512 }
  0x16   :  { %p454_p8 = scmp.ne.s32.totalorder %s707_s3, %s453_s15  ;;  %p457_p9 = scmp.lt.u32.totalorder %s453_s15, %s707_s3 }
  0x18   :  { %p459_p10 = pnand %p457_p9, %p454_p8 }
  0x1a   :  { %462 = shalt.err (!%p459_p10)
}
  0x1b   :  { %s463_s1 = scalar_lea.vmem %s53_s10, 512  ;;  %p468_p12 = scmp.lt.s32.totalorder %s53_s10, %s53_s10 }
  0x1c   :  { %p464_p11 = scmp.ne.s32.totalorder %s53_s10, %s463_s1  ;;  %p469_p13 = scmp.lt.s32.totalorder %s463_s1, %s463_s1 }
  0x1e   :  { %p470_p0 = por %p469_p13, %p468_p12 }
  0x20   :  { %p471_p1 = pnand %p470_p0, %p464_p11 }
  0x22   :  { %474 = shalt.err (!%p471_p1)
}
  0x23   :  { %s574_s20 = smov 128   ;;  %s575_s21 = smov 8  }
  0x24   :  { %58 = dma.hbm_to_vmem [thread:$0]  %s707_s3, 512, %s53_s10, [#allocation9], %s574_s20, %s574_s20, %s575_s21  }
  0x25   :  { %s475_s26 = scalar_lea.hbm %s704_s0, 128 }
  0x26   :  { %p476_p2 = scmp.ne.s32.totalorder %s704_s0, %s475_s26  ;;  %p479_p3 = scmp.lt.u32.totalorder %s475_s26, %s704_s0 }
  0x28   :  { %p481_p4 = pnand %p479_p3, %p476_p2 }
  0x2a   :  { %484 = shalt.err (!%p481_p4)
}
  0x2b   :  { %s485_s7 = scalar_lea.vmem %s22_s12, 128  ;;  %p490_p6 = scmp.lt.s32.totalorder %s22_s12, %s22_s12 }
  0x2c   :  { %p486_p5 = scmp.ne.s32.totalorder %s22_s12, %s485_s7  ;;  %p491_p7 = scmp.lt.s32.totalorder %s485_s7, %s485_s7 }
  0x2e   :  { %p492_p8 = por %p491_p7, %p490_p6 }
  0x30   :  { %p493_p9 = pnand %p492_p8, %p486_p5 }
  0x32   :  { %496 = shalt.err (!%p493_p9)
}
  0x33   :  { %24 = dma.hbm_to_vmem [thread:$0]  %s704_s0, 128, %s22_s12, [#allocation3]  }
  0x34   :  { %s576_s9 = smov [#allocation7]   ;;  %s577_s11 = smov [#allocation10]  }
  0x35   :  { %s40_s10 = sshll.u32 %s576_s9, 4  ;;  %s64_s13 = sshll.u32 %s577_s11, 4  ;;  %s41_s10 = int_to_ptr.vmem [resolvable:$true] %s40_s10  ;;  %s65_s13 = int_to_ptr.vmem [resolvable:$true] %s64_s13 }
  0x36   :  { %s497_s16 = scalar_lea.hbm %s706_s2, 512 }
  0x37   :  { %p498_p10 = scmp.ne.s32.totalorder %s706_s2, %s497_s16  ;;  %p501_p11 = scmp.lt.u32.totalorder %s497_s16, %s706_s2 }
  0x39   :  { %p503_p12 = pnand %p501_p11, %p498_p10 }
  0x3b   :  { %506 = shalt.err (!%p503_p12)
}
  0x3c   :  { %s507_s0 = scalar_lea.vmem %s41_s10, 512  ;;  %p512_p0 = scmp.lt.s32.totalorder %s41_s10, %s41_s10 }
  0x3d   :  { %p508_p13 = scmp.ne.s32.totalorder %s41_s10, %s507_s0  ;;  %p513_p1 = scmp.lt.s32.totalorder %s507_s0, %s507_s0 }
  0x3f   :  { %p514_p2 = por %p513_p1, %p512_p0 }
  0x41   :  { %p515_p3 = pnand %p514_p2, %p508_p13 }
  0x43   :  { %518 = shalt.err (!%p515_p3)
}
  0x44   :  { %46 = dma.hbm_to_vmem [thread:$0]  %s706_s2, 512, %s41_s10, [#allocation6], %s574_s20, %s574_s20, %s575_s21  }
  0x45   :  { %s519_s25 = scalar_lea.hbm %s708_s4, 512 }
  0x46   :  { %p520_p4 = scmp.ne.s32.totalorder %s708_s4, %s519_s25  ;;  %p523_p5 = scmp.lt.u32.totalorder %s519_s25, %s708_s4 }
  0x48   :  { %p525_p6 = pnand %p523_p5, %p520_p4 }
  0x4a   :  { %528 = shalt.err (!%p525_p6)
}
  0x4b   :  { %s529_s30 = scalar_lea.vmem %s65_s13, 512  ;;  %p534_p8 = scmp.lt.s32.totalorder %s65_s13, %s65_s13 }
  0x4c   :  { %p530_p7 = scmp.ne.s32.totalorder %s65_s13, %s529_s30  ;;  %p535_p9 = scmp.lt.s32.totalorder %s529_s30, %s529_s30 }
  0x4e   :  { %p536_p10 = por %p535_p9, %p534_p8 }
  0x50   :  { %p537_p11 = pnand %p536_p10, %p530_p7 }
  0x52   :  { %540 = shalt.err (!%p537_p11)
}
  0x53   :  { %70 = dma.hbm_to_vmem [thread:$0]  %s708_s4, 512, %s65_s13, [#allocation9], %s574_s20, %s574_s20, %s575_s21  }
  0x54   :  { %563 = dma.done.wait [#allocation3], 128  }
  0x55   :  { %564 = vsyncadd [#allocation3], 4294967168 }
  0x56   :  { %565 = dma.done.wait [#allocation6], 640  }
  0x57   :  { %566 = vsyncadd [#allocation6], 4294966656 }
  0x58   :  { %567 = dma.done.wait [#allocation9], 1024  }
  0x59   :  { %568 = vsyncadd [#allocation9], 4294966272  ;;  %v578_v0 = vmov 0.0|0.0   ;;  %vm579_vm0 = vmmov 0   ;;  %v580_v1 = vmov 0.0   ;;  %v94_v2 = vld [vmem:[#allocation8] sm:$0xff] }
  0x5a   :  { %402 = vmatprep.subr.bf16.mxu0 %v578_v0  ;;  %408 = vmatprep.subr.bf16.mxu1 %v578_v0  ;;  %v95_v3 = vld [vmem:[#allocation8 + $0x8] sm:$0xff]  ;;  %v90_v4 = vld [vmem:[#allocation7] sm:$0xff]  ;;  %v96_v7 = vld [vmem:[#allocation8 + $0x10] sm:$0xff]  ;;  %vm98_vm1 = vcmask 261120   ;;  %s581_s21 = smov [#allocation11]  }
  0x5b   :  { %377 = vmatprep.mubr.msk.f32.mxu0 %vm579_vm0, %v580_v1  ;;  %388 = vmatprep.mubr.msk.f32.mxu1 %vm579_vm0, %v580_v1  ;;  %v403_v5 = vpack.c.bf16 %v95_v3, %v94_v2  ;;  %v91_v6 = vld [vmem:[#allocation7 + $0x8] sm:$0xff]  ;;  %v97_v8 = vld [vmem:[#allocation8 + $0x18] sm:$0xff]  ;;  %v92_v10 = vld [vmem:[#allocation7 + $0x10] sm:$0xff]  ;;  %s339_s3 = sshll.u32 %s581_s21, 4  ;;  %s340_s3 = int_to_ptr.vmem [resolvable:$true] %s339_s3 }
  0x5c   :  { %v409_v9 = vpack.c.bf16 %v91_v6, %v90_v4  ;;  %v93_v11 = vld [vmem:[#allocation7 + $0x18] sm:$0xff]  ;;  %v406_v12 = vpack.c.bf16 %v97_v8, %v96_v7  ;;  %v246_v14 = vld [vmem:[#allocation10] sm:$0xff]  ;;  %v247_v15 = vld [vmem:[#allocation10 + $0x8] sm:$0xff]  ;;  %s541_s8 = scalar_lea.vmem %s340_s3, 128  ;;  %p546_p13 = scmp.lt.s32.totalorder %s340_s3, %s340_s3 }
  0x5d   :  { %404 = vmatpush3.bf16.msra.mxu0 %v403_v5  ;;  %v412_v13 = vpack.c.bf16 %v93_v11, %v92_v10  ;;  %v89_v16 = vld [vmem:[#allocation5] sm:$0xff]  ;;  %v415_v17 = vpack.c.bf16 %v247_v15, %v246_v14  ;;  %v88_v18 = vld [vmem:[#allocation2] sm:$0xff]  ;;  %p542_p12 = scmp.ne.s32.totalorder %s340_s3, %s541_s8  ;;  %p547_p0 = scmp.lt.s32.totalorder %s541_s8, %s541_s8 }
  0x5e   :  { %410 = vmatpush3.bf16.msra.mxu1 %v409_v9  ;;  %405 = vmatprep.subr.bf16.mxu0 %v578_v0  ;;  %v248_v19 = vld [vmem:[#allocation10 + $0x10] sm:$0xff]  ;;  %v249_v20 = vld [vmem:[#allocation10 + $0x18] sm:$0xff]  ;;  %v245_v22 = vmul.f32 %v89_v16, %v88_v18 }
  0x5f   :  { %411 = vmatprep.subr.bf16.mxu1 %v578_v0  ;;  %v418_v21 = vpack.c.bf16 %v249_v20, %v248_v19  ;;  %v353_v29 = vld [vmem:[%s709_s5] ss:$0 sm:$0xff]  ;;  %p548_p1 = por %p547_p0, %p546_p13 }
  0x61   :  { %407 = vmatpush3.bf16.msra.mxu0 %v406_v12  ;;  %p549_p2 = pnand %p548_p1, %p542_p12 }
  0x62   :  { %413 = vmatpush3.bf16.msra.mxu1 %v412_v13  ;;  %414 = vmatprep.subr.bf16.mxu0 %v578_v0 }
  0x64   :  { %378 = vmatmul.mubr.msk.f32.vlgmr.msra.gmra.mrb[0].mxu0 %vm98_vm1, %v89_v16 }
  0x65   :  { %389 = vmatmul.mubr.msk.f32.vlgmr.msra.gmra.mrb[0].mxu1 %vm98_vm1, %v88_v18  ;;  %416 = vmatpush3.bf16.msra.mxu0 %v415_v17 }
  0x66   :  { %417 = vmatprep.subr.bf16.mxu0 %v578_v0  ;;  %399 = vmatprep.mubr.msk.f32.mxu0 %vm579_vm0, %v580_v1 }
  0x69   :  { %419 = vmatpush3.bf16.msra.mxu0 %v418_v21 }
  0x6c   :  { %400 = vmatmul.mubr.msk.f32.vlgmr.msra.gmra.mrb[2].mxu0 %vm98_vm1, %v245_v22 }
 0x137   :  { %v168_v23 = vpop.f32.mrb[0].mxu0 }
 0x138   :  { %v379_v24 = vpop.f32.mrb[1].mxu0  ;;  %v241_v25 = vpop.f32.mrb[0].mxu1 }
 0x139   :  { %v242_v26 = vadd.f32 %v241_v25, %v168_v23  ;;  %v390_v27 = vpop.f32.mrb[1].mxu1 }
 0x13f   :  { %v319_v28 = vpop.f32.mrb[2].mxu0 }
 0x140   :  { %v323_v30 = vadd.f32 %v319_v28, %v242_v26  ;;  %v401_v31 = vpop.f32.mrb[3].mxu0 }
 0x142   :  { %v331_v32 = vadd.f32 %v353_v29, %v323_v30 }
 0x144   :  { %332 = vst [vmem:[#allocation11] sm:$0xff] %v331_v32 }
 0x145   :  { %552 = shalt.err (!%p549_p2)
}
 0x146   :  { %s553_s11 = scalar_lea.hbm %s710_s6, 128 }
 0x147   :  { %p554_p3 = scmp.ne.s32.totalorder %s710_s6, %s553_s11  ;;  %p557_p4 = scmp.lt.u32.totalorder %s553_s11, %s710_s6 }
 0x149   :  { %p559_p5 = pnand %p557_p4, %p554_p3 }
 0x14b   :  { %562 = shalt.err (!%p559_p5)
}
 0x14c   :  { %342 = dma.vmem_to_hbm [thread:$0]  %s340_s3, 128, %s710_s6, [#allocation4]  }
 0x14d   :  { %569 = dma.done.wait [#allocation4], 128  }
 0x14e   :  { %570 = vsyncadd [#allocation4], 4294967168 }
 0x14f   :  { %346 = vsyncpa [#allocation3], 1 }
 0x150   :  { %347 = vsyncpa [#allocation6], 1 }
 0x151   :  { %348 = vsyncpa [#allocation9], 1 }
 0x152   :  { %349 = vsyncpa [#allocation4], 1 }

</bundles_post_ra>
